<compile_context>
chip_gen: v7x
topology: tpu7x:2x2x1
jax: 0.10.0
libtpu: 0.0.40
codegen_flags: <defaults>
</compile_context>

<pallas_src>
import math

import jax
import jax.numpy as jnp
from jax.experimental import pallas as pl
from jax.experimental.pallas import tpu as pltpu


def _round_up(x, m):
    return ((x + m - 1) // m) * m


def _rnet_kernel(x_ref, w1_ref, wo_ref, bo_ref, o_ref):
    # Fused branch GEMM.  x = [x_n | x_p | 1],
    # w1 = [[W_m, 0], [0, W_p], [b_m, b_p]]  (zero-padded to 128-lane width),
    # so one dot gives ReLU-input for both branches at once.
    h = jnp.dot(x_ref[...], w1_ref[...], preferred_element_type=jnp.float32)
    h = jnp.maximum(h, 0.0)  # ReLU (zero-padded hidden lanes stay zero)

    # o_net: concat([h_n, h_p]) @ W_o + b_o  (padded W_o rows are zero).
    logits = jnp.dot(h, wo_ref[...],
                     preferred_element_type=jnp.float32) + bo_ref[...]

    # log_softmax over dim=1 (numerically stable); max/sum -> XLU, exp/log -> EUP.
    m = jnp.max(logits, axis=-1, keepdims=True)
    lse = m + jnp.log(jnp.sum(jnp.exp(logits - m), axis=-1, keepdims=True))
    o_ref[...] = logits - lse


def rnet_forward(x_n, x_p, params, *, tile_b=512):
    """Full R_Net forward in one Pallas kernel, with wrapper-side weight packing."""
    W_m, b_m = params["W_m"], params["b_m"]
    W_p, b_p = params["W_p"], params["b_p"]
    W_o, b_o = params["W_o"], params["b_o"]

    Fm, H = W_m.shape
    Fp = W_p.shape[0]
    out_ch = W_o.shape[1]
    B = x_n.shape[0]

    twoH = 2 * H
    Hp = _round_up(twoH, 128)       # lane-dense hidden slab
    K = Fm + Fp + 1                 # +1 for the folded-bias ones column

    # --- wrapper-side packing (cheap, one-time XLA ops) -----------------------
    # Block-diagonal branch weights + hidden biases folded into the last row.
    w1 = jnp.zeros((K, Hp), jnp.float32)
    w1 = w1.at[:Fm, :H].set(W_m.astype(jnp.float32))
    w1 = w1.at[Fm:Fm + Fp, H:twoH].set(W_p.astype(jnp.float32))
    w1 = w1.at[Fm + Fp, :H].set(b_m.reshape(-1).astype(jnp.float32))
    w1 = w1.at[Fm + Fp, H:twoH].set(b_p.reshape(-1).astype(jnp.float32))

    # Output weight padded to the lane-dense hidden width (extra rows are zero).
    wo = jnp.zeros((Hp, out_ch), jnp.float32)
    wo = wo.at[:twoH, :].set(W_o.astype(jnp.float32))
    bo = b_o.reshape(1, out_ch).astype(jnp.float32)

    # Augmented activations: [x_n | x_p | 1].
    ones = jnp.ones((B, 1), jnp.float32)
    x = jnp.concatenate(
        [x_n.astype(jnp.float32), x_p.astype(jnp.float32), ones], axis=1)

    # --- batch tiling ---------------------------------------------------------
    tb = min(_round_up(B, 8), tile_b)   # multiple of 8, capped for VMEM budget
    Bp = _round_up(B, tb)
    if Bp != B:
        x = jnp.pad(x, ((0, Bp - B), (0, 0)))

    grid = (Bp // tb,)

    out = pl.pallas_call(
        _rnet_kernel,
        out_shape=jax.ShapeDtypeStruct((Bp, out_ch), jnp.float32),
        grid_spec=pltpu.PrefetchScalarGridSpec(
            num_scalar_prefetch=0,
            grid=grid,
            in_specs=[
                pl.BlockSpec((tb, K), lambda i: (i, 0)),        # activations stream
                pl.BlockSpec((K, Hp), lambda i: (0, 0)),        # packed W1 (resident)
                pl.BlockSpec((Hp, out_ch), lambda i: (0, 0)),   # padded W_o (resident)
                pl.BlockSpec((1, out_ch), lambda i: (0, 0)),    # output bias
            ],
            out_specs=pl.BlockSpec((tb, out_ch), lambda i: (i, 0)),
        ),
        compiler_params=pltpu.CompilerParams(
            dimension_semantics=("parallel",)),
    )(x, w1, wo, bo)

    return out[:B]


def init_params(key, n_feature_m, n_feature_p, output_channel=4):
    """Deterministic synthetic parameters matching R_Net.__init__ shapes.
    Weights stored (in_features, out_features) so forward is x @ W + b."""
    hidden = int(math.sqrt(n_feature_m * n_feature_p * output_channel))
    k1, k2, k3, k4, k5, k6 = jax.random.split(key, 6)
    params = {
        "W_m": jax.random.normal(k1, (n_feature_m, hidden), jnp.float32) * 0.1,
        "b_m": jax.random.normal(k2, (1, hidden), jnp.float32) * 0.1,
        "W_p": jax.random.normal(k3, (n_feature_p, hidden), jnp.float32) * 0.1,
        "b_p": jax.random.normal(k4, (1, hidden), jnp.float32) * 0.1,
        "W_o": jax.random.normal(k5, (2 * hidden, output_channel),
                                 jnp.float32) * 0.1,
        "b_o": jax.random.normal(k6, (1, output_channel), jnp.float32) * 0.1,
    }
    return params, hidden


def rnet_reference(x_n, x_p, params):
    """Pure-JAX reference (mirrors the PyTorch module)."""
    h_n = jax.nn.relu(x_n @ params["W_m"] + params["b_m"])
    h_p = jax.nn.relu(x_p @ params["W_p"] + params["b_p"])
    logits = jnp.concatenate([h_n, h_p], axis=1) @ params["W_o"] + params["b_o"]
    return jax.nn.log_softmax(logits, axis=1)


if __name__ == "__main__":
    # Small shapes consistent with the module's forward.
    n_feature_m = 32
    n_feature_p = 32
    batch = 8

    key = jax.random.PRNGKey(0)
    kx, kp, kparams = jax.random.split(key, 3)

    params, hidden = init_params(kparams, n_feature_m, n_feature_p)

    x_n = jax.random.normal(kx, (batch, n_feature_m), jnp.float32)
    x_p = jax.random.normal(kp, (batch, n_feature_p), jnp.float32)

    out = rnet_forward(x_n, x_p, params)
    out = jax.block_until_ready(out)

    ref = rnet_reference(x_n, x_p, params)
    assert out.shape == (batch, 4), out.shape
    assert jnp.allclose(out, ref, atol=1e-4, rtol=1e-4), (
        float(jnp.max(jnp.abs(out - ref))))

    print("KERNEL_OK")
</pallas_src>

<mosaic_0001>
module attributes {stable_mosaic.version = 11 : i64} {
  func.func @_rnet_kernel(%arg0: i32, %arg1: memref<8x65xf32, #tpu.memory_space<vmem>>, %arg2: memref<65x128xf32, #tpu.memory_space<vmem>>, %arg3: memref<128x4xf32, #tpu.memory_space<vmem>>, %arg4: memref<1x4xf32, #tpu.memory_space<vmem>>, %arg5: memref<8x4xf32, #tpu.memory_space<vmem>>) attributes {dimension_semantics = [#tpu.dimension_semantics<parallel>], iteration_bounds = array<i64: 1>, scalar_prefetch = 0 : i64, scratch_operands = 0 : i64, tpu.core_type = #tpu.core_type<tc>, window_params = [{transform_indices = @transform_0, window_bounds = array<i64: 8, 65>}, {pipeline_mode = #tpu.pipeline_mode<synchronous>, transform_indices = @transform_1, window_bounds = array<i64: 65, 128>}, {pipeline_mode = #tpu.pipeline_mode<synchronous>, transform_indices = @transform_2, window_bounds = array<i64: 128, 4>}, {pipeline_mode = #tpu.pipeline_mode<synchronous>, transform_indices = @transform_3, window_bounds = array<i64: 1, 4>}, {transform_indices = @transform_4, window_bounds = array<i64: 8, 4>}]} {
    %c0 = arith.constant 0 : index
    %c0_0 = arith.constant 0 : index
    %0 = vector.load %arg1[%c0, %c0_0] : memref<8x65xf32, #tpu.memory_space<vmem>>, vector<8x65xf32>
    %c0_1 = arith.constant 0 : index
    %c0_2 = arith.constant 0 : index
    %1 = vector.load %arg2[%c0_1, %c0_2] : memref<65x128xf32, #tpu.memory_space<vmem>>, vector<65x128xf32>
    %cst = arith.constant dense<0.000000e+00> : vector<8x128xf32>
    %2 = tpu.matmul %0, %1, %cst {dimension_numbers = #tpu.dot_dimension_numbers<[1], [0], [0], [1], [0, 0, 1, 1], [], []>} : vector<8x65xf32>, vector<65x128xf32>, vector<8x128xf32> -> vector<8x128xf32>
    %cst_3 = arith.constant 0.000000e+00 : f32
    %3 = vector.broadcast %cst_3 : f32 to vector<8x128xf32>
    %4 = arith.maximumf %2, %3 : vector<8x128xf32>
    %c0_4 = arith.constant 0 : index
    %c0_5 = arith.constant 0 : index
    %5 = vector.load %arg3[%c0_4, %c0_5] : memref<128x4xf32, #tpu.memory_space<vmem>>, vector<128x4xf32>
    %cst_6 = arith.constant dense<0.000000e+00> : vector<8x4xf32>
    %6 = tpu.matmul %4, %5, %cst_6 {dimension_numbers = #tpu.dot_dimension_numbers<[1], [0], [0], [1], [0, 0, 1, 1], [], []>} : vector<8x128xf32>, vector<128x4xf32>, vector<8x4xf32> -> vector<8x4xf32>
    %c0_7 = arith.constant 0 : index
    %c0_8 = arith.constant 0 : index
    %7 = vector.load %arg4[%c0_7, %c0_8] : memref<1x4xf32, #tpu.memory_space<vmem>>, vector<1x4xf32>
    %8 = vector.broadcast %7 : vector<1x4xf32> to vector<8x4xf32>
    %9 = arith.addf %6, %8 : vector<8x4xf32>
    %cst_9 = arith.constant dense<0xFF800000> : vector<8xf32>
    %10 = vector.multi_reduction <maximumf>, %9, %cst_9 [1] : vector<8x4xf32> to vector<8xf32>
    %11 = vector.shape_cast %10 : vector<8xf32> to vector<8x1xf32>
    %12 = vector.broadcast %11 : vector<8x1xf32> to vector<8x4xf32>
    %13 = arith.subf %9, %12 : vector<8x4xf32>
    %14 = math.exp %13 : vector<8x4xf32>
    %cst_10 = arith.constant dense<0.000000e+00> : vector<8xf32>
    %15 = vector.multi_reduction <add>, %14, %cst_10 [1] : vector<8x4xf32> to vector<8xf32>
    %16 = vector.shape_cast %15 : vector<8xf32> to vector<8x1xf32>
    %17 = math.log %16 : vector<8x1xf32>
    %18 = arith.addf %11, %17 : vector<8x1xf32>
    %19 = vector.broadcast %18 : vector<8x1xf32> to vector<8x4xf32>
    %20 = arith.subf %9, %19 : vector<8x4xf32>
    %c0_11 = arith.constant 0 : index
    %c0_12 = arith.constant 0 : index
    %21 = vector.load %arg5[%c0_11, %c0_12] : memref<8x4xf32, #tpu.memory_space<vmem>>, vector<8x4xf32>
    tpu.vector_store %arg5[%c0_11, %c0_12], %20 {strides = array<i32>} : memref<8x4xf32, #tpu.memory_space<vmem>>, vector<8x4xf32>,
    return
  }
  func.func @transform_0(%arg0: i32) -> (i32, i32) {
    %c0_i32 = arith.constant 0 : i32
    %c0_i32_0 = arith.constant 0 : i32
    return %arg0, %c0_i32 : i32, i32
  }
  func.func @transform_1(%arg0: i32) -> (i32, i32) {
    %c0_i32 = arith.constant 0 : i32
    %c0_i32_0 = arith.constant 0 : i32
    %c0_i32_1 = arith.constant 0 : i32
    return %c0_i32, %c0_i32_0 : i32, i32
  }
  func.func @transform_2(%arg0: i32) -> (i32, i32) {
    %c0_i32 = arith.constant 0 : i32
    %c0_i32_0 = arith.constant 0 : i32
    %c0_i32_1 = arith.constant 0 : i32
    return %c0_i32, %c0_i32_0 : i32, i32
  }
  func.func @transform_3(%arg0: i32) -> (i32, i32) {
    %c0_i32 = arith.constant 0 : i32
    %c0_i32_0 = arith.constant 0 : i32
    %c0_i32_1 = arith.constant 0 : i32
    return %c0_i32, %c0_i32_0 : i32, i32
  }
  func.func @transform_4(%arg0: i32) -> (i32, i32) {
    %c0_i32 = arith.constant 0 : i32
    %c0_i32_0 = arith.constant 0 : i32
    return %arg0, %c0_i32 : i32, i32
  }
}

</mosaic_0001>

<bundles_post_ra>
// kernel: tpu_custom_call.1
= control target key start
LH: loop header
LB: loop body
LE: loop exit
PB: predicated region body
PF: predicated region fallthrough
CT: control target
= control target key end

     0   :  { %v347_v0 = vmov 0.0|0.0   ;;  %vm348_vm0 = vmmov 0   ;;  %v349_v4 = vmov 0.0   ;;  %vm31_vm1 = vcmask 1040384   ;;  %s474_s1 = inlined_call_operand.vmem [shape: f32[65,128], index: 1, kind: input, shape index: {}]   ;;  %s475_s2 = inlined_call_operand.vmem [shape: f32[128,4], index: 2, kind: input, shape index: {}]   ;;  %s476_s0 = inlined_call_operand.vmem [shape: f32[8,65], index: 0, kind: input, shape index: {}]   ;;  %s477_s3 = inlined_call_operand.vmem [shape: f32[1,4], index: 3, kind: input, shape index: {}]   ;;  %s478_s4 = inlined_call_operand.vmem [shape: f32[8,4], index: 4, kind: output, shape index: {}]  }
   0x1   :  { %304 = vmatprep.subr.bf16.mxu0 %v347_v0  ;;  %v18_v1 = vld [vmem:[%s474_s1] sm:$0xff]  ;;  %v19_v2 = vld [vmem:[%s474_s1 + $0x8] sm:$0xff]  ;;  %v20_v3 = vld [vmem:[%s474_s1 + $0x10] sm:$0xff]  ;;  %266 = vmatprep.mubr.msk.f32.mxu0 %vm348_vm0, %v349_v4  ;;  %vm27_vm2 = vcmask 531456   ;;  %vm199_vm3 = vcmask 31744  }
   0x2   :  { %v305_v5 = vpack.c.bf16 %v19_v2, %v18_v1  ;;  %v21_v6 = vld [vmem:[%s474_s1 + $0x18] sm:$0xff]  ;;  %316 = vmatprep.subr.bf16.mxu1 %v347_v0  ;;  %301 = vmatprep.mubr.msk.f32.mxu1 %vm348_vm0, %v349_v4  ;;  %v22_v8 = vld [vmem:[%s474_s1 + $0x20] sm:$0xff]  ;;  %v107_v10 = vld [vmem:[%s475_s2 + $0x8] sm:$0xff] }
   0x3   :  { %v308_v7 = vpack.c.bf16 %v21_v6, %v20_v3  ;;  %v106_v9 = vld [vmem:[%s475_s2] sm:$0xff]  ;;  %v23_v11 = vld [vmem:[%s474_s1 + $0x28] sm:$0xff]  ;;  %v108_v13 = vld [vmem:[%s475_s2 + $0x10] sm:$0xff] }
   0x4   :  { %306 = vmatpush3.bf16.msra.mxu0 %v305_v5  ;;  %v317_v12 = vpack.c.bf16 %v107_v10, %v106_v9  ;;  %v109_v14 = vld [vmem:[%s475_s2 + $0x18] sm:$0xff]  ;;  %v311_v16 = vpack.c.bf16 %v23_v11, %v22_v8  ;;  %v110_v17 = vld [vmem:[%s475_s2 + $0x20] sm:$0xff]  ;;  %v111_v18 = vld [vmem:[%s475_s2 + $0x28] sm:$0xff] }
   0x5   :  { %307 = vmatprep.subr.bf16.mxu0 %v347_v0  ;;  %v320_v15 = vpack.c.bf16 %v109_v14, %v108_v13  ;;  %v24_v19 = vld [vmem:[%s474_s1 + $0x30] sm:$0xff]  ;;  %v25_v20 = vld [vmem:[%s474_s1 + $0x38] sm:$0xff]  ;;  %v323_v21 = vpack.c.bf16 %v111_v18, %v110_v17  ;;  %v114_v26 = vld [vmem:[%s475_s2 + $0x40] sm:$0xff] }
   0x6   :  { %318 = vmatpush3.bf16.msra.mxu1 %v317_v12  ;;  %v314_v22 = vpack.c.bf16 %v25_v20, %v24_v19  ;;  %v112_v23 = vld [vmem:[%s475_s2 + $0x30] sm:$0xff]  ;;  %v113_v24 = vld [vmem:[%s475_s2 + $0x38] sm:$0xff]  ;;  %v115_v27 = vld [vmem:[%s475_s2 + $0x48] sm:$0xff] }
   0x7   :  { %319 = vmatprep.subr.bf16.mxu1 %v347_v0  ;;  %v326_v25 = vpack.c.bf16 %v113_v24, %v112_v23  ;;  %v26_v28 = vld [vmem:[%s474_s1 + $0x40] sm:$0x1]  ;;  %v329_v30 = vpack.c.bf16 %v115_v27, %v114_v26  ;;  %v116_v31 = vld [vmem:[%s475_s2 + $0x50] sm:$0xff]  ;;  %v117_v32 = vld [vmem:[%s475_s2 + $0x58] sm:$0xff] }
   0x8   :  { %309 = vmatpush3.bf16.msra.mxu0 %v308_v7  ;;  %v17_v29 = vld [vmem:[%s476_s0] sm:$0xff]  ;;  %v332_v33 = vpack.c.bf16 %v117_v32, %v116_v31  ;;  %v119_v35 = vld [vmem:[%s475_s2 + $0x68] sm:$0xff]  ;;  %v120_v37 = vld [vmem:[%s475_s2 + $0x70] sm:$0xff] }
   0x9   :  { %310 = vmatprep.subr.bf16.mxu0 %v347_v0  ;;  %v118_v34 = vld [vmem:[%s475_s2 + $0x60] sm:$0xff]  ;;  %v121_v38 = vld [vmem:[%s475_s2 + $0x78] sm:$0xff] }
   0xa   :  { %321 = vmatpush3.bf16.msra.mxu1 %v320_v15  ;;  %v335_v36 = vpack.c.bf16 %v119_v35, %v118_v34  ;;  %v338_v39 = vpack.c.bf16 %v121_v38, %v120_v37  ;;  %v220_v43 = vld [vmem:[%s477_s3] ss:$0 sm:$0xff] }
   0xb   :  { %322 = vmatprep.subr.bf16.mxu1 %v347_v0 }
   0xc   :  { %312 = vmatpush3.bf16.msra.mxu0 %v311_v16 }
   0xd   :  { %313 = vmatprep.subr.bf16.mxu0 %v347_v0 }
   0xe   :  { %324 = vmatpush3.bf16.msra.mxu1 %v323_v21 }
   0xf   :  { %325 = vmatprep.subr.bf16.mxu1 %v347_v0 }
  0x10   :  { %315 = vmatpush3.bf16.msra.mxu0 %v314_v22 }
  0x11   :  { %264 = vmatprep.subr.mxu0 %v349_v4 }
  0x12   :  { %327 = vmatpush3.bf16.msra.mxu1 %v326_v25 }
  0x13   :  { %328 = vmatprep.subr.bf16.mxu1 %v347_v0 }
  0x14   :  { %265 = vmatpush3.msk.msra.mxu0 %vm31_vm1, %v26_v28 }
  0x15   :  { %267 = vmatmul.mubr.msk.f32.vlgmr.msra.gmra.mrb[0].mxu0 %vm27_vm2, %v17_v29 }
  0x16   :  { %330 = vmatpush3.bf16.msra.mxu1 %v329_v30 }
  0x17   :  { %331 = vmatprep.subr.bf16.mxu1 %v347_v0 }
  0x1a   :  { %333 = vmatpush3.bf16.msra.mxu1 %v332_v33 }
  0x1b   :  { %334 = vmatprep.subr.bf16.mxu1 %v347_v0 }
  0x1e   :  { %336 = vmatpush3.bf16.msra.mxu1 %v335_v36 }
  0x1f   :  { %337 = vmatprep.subr.bf16.mxu1 %v347_v0 }
  0x22   :  { %339 = vmatpush3.bf16.msra.mxu1 %v338_v39 }
  0xe8   :  { %v101_v40 = vpop.f32.mrb[0].mxu0 }
  0xe9   :  { %v105_v41 = vmax.f32 %v101_v40, 0.0  ;;  %v268_v42 = vpop.f32.mrb[1].mxu0 }
  0xeb   :  { %302 = vmatmul.mubr.f32.vlgmr.msra.gmra.mrb[0].mxu1 %v105_v41 }
 0x1be   :  { %v195_v44 = vpop.f32.mrb[0].mxu1 }
 0x1bf   :  { %v196_v45 = vadd.f32 %v220_v43, %v195_v44  ;;  %v303_v46 = vpop.f32.mrb[1].mxu1 }
 0x1c1   :  { %v200_v47 = vsel %vm199_vm3, %v196_v45, -inf }
 0x1c2   :  { %201 = vmax.xlane.f32.xlu0 %v200_v47 }
 0x24f   :  { %v202_v48 = vpop.xlane.xlu0 %201 }
 0x250   :  { %v203_v49 = vsub.f32 %v196_v45, %v202_v48 }
 0x252   :  { %v204_v50 = vmul.f32 1.442695, %v203_v49 }
 0x254   :  { %343 = vpow2.f32 %v204_v50 }
 0x25e   :  { %v344_v51 = vpop.eup %343 }
 0x25f   :  { %v206_v52 = vsel %vm199_vm3, %v344_v51, 0.0 }
 0x260   :  { %207 = vadd.xlane.f32.xlu0 %v206_v52 }
 0x2ed   :  { %v208_v53 = vpop.xlane.xlu0 %207 }
 0x2ee   :  { %345 = vlog2.f32 %v208_v53 }
 0x2f8   :  { %v346_v54 = vpop.eup %345 }
 0x2f9   :  { %v210_v55 = vmul.f32 0.6931472, %v346_v54 }
 0x2fb   :  { %v211_v56 = vadd.f32 %v210_v55, %v202_v48 }
 0x2fd   :  { %v212_v57 = vsub.f32 %v196_v45, %v211_v56 }
 0x2ff   :  { %213 = vst.msk [vmem:[%s478_s4] sm:$0xff] %vm199_vm3, %v212_v57 }

</bundles_post_ra>
